<compile_context>
chip_gen: v6e
topology: v6e:2x2x1
jax: 0.10.0
libtpu: 0.0.40
codegen_flags: <defaults>
</compile_context>

<pallas_src>
import functools

import jax
import jax.numpy as jnp
from jax.experimental import pallas as pl
from jax.experimental.pallas import tpu as pltpu


# ----------------------------------------------------------------------------
# Pallas kernel: tiled matmul + affine shift (+ optional LeakyReLU) epilogue
# ----------------------------------------------------------------------------
def _matmul_epilogue_kernel(p_ref, w_ref, shift_ref, o_ref, *, leaky_slope):
    # MXU matmul: bf16 x bf16 -> f32 accumulate.
    acc = jnp.dot(p_ref[...], w_ref[...], preferred_element_type=jnp.float32)
    y = acc + shift_ref[...]                      # (1, Dp) broadcast over rows
    if leaky_slope is not None:                   # fused LeakyReLU (f32 epilogue)
        y = jnp.where(y > 0, y, leaky_slope * y)
    o_ref[...] = y.astype(o_ref.dtype)


def _round_up(n, m):
    return ((n + m - 1) // m) * m


def fused_matmul_affine(P, Wm, shift, *, leaky_slope=None, tm=256):
    """out[:M] = epilogue(P @ Wm + shift) with an M-tiled, pipelined grid.

    P:     (M, K)  float32  (cast to bf16 here)
    Wm:    (K, Dp) bfloat16 (Dp a multiple of 128, grid-resident)
    shift: (1, Dp) float32
    """
    M, K = P.shape
    Kw, Dp = Wm.shape
    assert K == Kw and Dp % 128 == 0 and tm % 8 == 0

    Mp = _round_up(M, tm)
    if Mp != M:
        P = jnp.pad(P, ((0, Mp - M), (0, 0)))     # padded rows discarded below

    kernel = functools.partial(_matmul_epilogue_kernel, leaky_slope=leaky_slope)
    out = pl.pallas_call(
        kernel,
        out_shape=jax.ShapeDtypeStruct((Mp, Dp), jnp.float32),
        grid_spec=pltpu.PrefetchScalarGridSpec(
            num_scalar_prefetch=0,
            grid=(Mp // tm,),
            in_specs=[
                pl.BlockSpec((tm, K), lambda i: (i, 0)),   # row tile of patches
                pl.BlockSpec((K, Dp), lambda i: (0, 0)),   # resident weight
                pl.BlockSpec((1, Dp), lambda i: (0, 0)),   # resident shift
            ],
            out_specs=pl.BlockSpec((tm, Dp), lambda i: (i, 0)),
        ),
        compiler_params=pltpu.CompilerParams(
            dimension_semantics=("parallel",),             # v7x: 2 TCs split rows
            vmem_limit_bytes=32 * 1024 * 1024,             # safe budget on v5e/v6e/v7x
        ),
    )(P.astype(jnp.bfloat16), Wm, shift)
    return out[:M]


# ----------------------------------------------------------------------------
# Glue: im2col patch extraction, weight reshapes, layout transposes
# ----------------------------------------------------------------------------
def im2col(xp_nhwc, k, stride, Ho, Wo):
    """xp_nhwc is already spatially padded. Returns (B*Ho*Wo, k*k*C)."""
    B = xp_nhwc.shape[0]
    C = xp_nhwc.shape[-1]
    taps = []
    for kh in range(k):
        for kw in range(k):
            taps.append(
                xp_nhwc[:, kh:kh + stride * Ho:stride, kw:kw + stride * Wo:stride, :]
            )
    P = jnp.stack(taps, axis=3)  # (B, Ho, Wo, k*k, C); tap order (kh, kw)
    return P.reshape(B * Ho * Wo, k * k * C)


def torch_weight_to_matrix(w_oihw, d_pad):
    """(D, C, KH, KW) torch conv weight -> (KH*KW*C, d_pad) matmul weight."""
    D = w_oihw.shape[0]
    Wm = jnp.transpose(w_oihw, (2, 3, 1, 0)).reshape(-1, D)
    return jnp.pad(Wm, ((0, 0), (0, d_pad - D)))           # lane-dense N


def resnet_block_forward(x_nchw, params, eps=1e-5, tm=256):
    B, Cin, H, W = x_nchw.shape
    D = params["w1"].shape[0]
    Dp = _round_up(D, 128)

    x = jnp.transpose(x_nchw, (0, 2, 3, 1))                 # NHWC
    xp = jnp.pad(x, ((0, 0), (1, 1), (1, 1), (0, 0)))       # padding=1

    # ---- stage 1: conv1 (stride 1) + bn1(eval) + leaky_relu, fully folded ----
    scale = params["bn_gamma"] / jnp.sqrt(params["bn_var"] + eps)
    shift1 = (params["b1"] - params["bn_mean"]) * scale + params["bn_beta"]
    W1 = torch_weight_to_matrix(params["w1"], Dp) * jnp.pad(scale, (0, Dp - D))[None, :]
    P1 = im2col(xp, 3, 1, H, W)                             # (B*H*W, 9*Cin)
    y_flat = fused_matmul_affine(
        P1, W1.astype(jnp.bfloat16), jnp.pad(shift1, (0, Dp - D))[None, :],
        leaky_slope=0.01, tm=tm)                            # (B*H*W, Dp)
    y = y_flat[:, :D].reshape(B, H, W, D)
    # dropout: eval-mode identity

    # ---- stage 2: conv2(y, stride 3) + conv11(x, stride 3) as ONE matmul ----
    Ho = (H + 2 - 3) // 3 + 1
    Wo = (W + 2 - 3) // 3 + 1
    yp = jnp.pad(y, ((0, 0), (1, 1), (1, 1), (0, 0)))
    P2 = im2col(yp, 3, 3, Ho, Wo)                           # (B*Ho*Wo, 9*D)
    P11 = im2col(xp, 3, 3, Ho, Wo)                          # (B*Ho*Wo, 9*Cin)
    Pcat = jnp.concatenate([P2, P11], axis=1)               # (B*Ho*Wo, 9*(D+Cin))
    Wcat = jnp.concatenate(
        [torch_weight_to_matrix(params["w2"], Dp),
         torch_weight_to_matrix(params["w11"], Dp)], axis=0).astype(jnp.bfloat16)
    shift2 = jnp.pad(params["b2"] + params["b11"], (0, Dp - D))[None, :]
    out_flat = fused_matmul_affine(Pcat, Wcat, shift2, leaky_slope=None, tm=tm)
    out = out_flat[:, :D].reshape(B, Ho, Wo, D)
    return jnp.transpose(out, (0, 3, 1, 2))                 # back to NCHW


# ----------------------------------------------------------------------------
# Deterministic parameter init (shapes from ResNetBlock.__init__)
# ----------------------------------------------------------------------------
def make_params(key, in_depth, depth):
    ks = jax.random.split(key, 10)
    return {
        "w1": jax.random.normal(ks[0], (depth, in_depth, 3, 3), jnp.float32) * 0.1,
        "b1": jax.random.normal(ks[1], (depth,), jnp.float32) * 0.1,
        "w2": jax.random.normal(ks[2], (depth, depth, 3, 3), jnp.float32) * 0.1,
        "b2": jax.random.normal(ks[3], (depth,), jnp.float32) * 0.1,
        "w11": jax.random.normal(ks[4], (depth, in_depth, 3, 3), jnp.float32) * 0.1,
        "b11": jax.random.normal(ks[5], (depth,), jnp.float32) * 0.1,
        "bn_gamma": 1.0 + 0.1 * jax.random.normal(ks[6], (depth,), jnp.float32),
        "bn_beta": 0.1 * jax.random.normal(ks[7], (depth,), jnp.float32),
        "bn_mean": 0.1 * jax.random.normal(ks[8], (depth,), jnp.float32),
        "bn_var": 0.5 + jax.random.uniform(ks[9], (depth,), jnp.float32),
    }


# ----------------------------------------------------------------------------
# Pure-JAX reference (lax.conv, float32) for correctness check
# ----------------------------------------------------------------------------
def _conv_ref(x, w, b, stride):
    y = jax.lax.conv_general_dilated(
        x, w, (stride, stride), [(1, 1), (1, 1)],
        dimension_numbers=("NCHW", "OIHW", "NCHW"))
    return y + b[None, :, None, None]


def reference_forward(x, p, eps=1e-5):
    prev_mp = _conv_ref(x, p["w11"], p["b11"], 3)
    out = _conv_ref(x, p["w1"], p["b1"], 1)
    out = (out - p["bn_mean"][None, :, None, None]) / jnp.sqrt(
        p["bn_var"][None, :, None, None] + eps)
    out = out * p["bn_gamma"][None, :, None, None] + p["bn_beta"][None, :, None, None]
    out = jnp.where(out > 0, out, 0.01 * out)
    out = _conv_ref(out, p["w2"], p["b2"], 3)
    return out + prev_mp


if __name__ == "__main__":
    B, Cin, D, H, W = 2, 4, 8, 16, 16
    key = jax.random.PRNGKey(0)
    kx, kp = jax.random.split(key)
    x = jax.random.normal(kx, (B, Cin, H, W), jnp.float32)
    params = make_params(kp, Cin, D)

    fwd = jax.jit(resnet_block_forward)
    out = jax.block_until_ready(fwd(x, params))
    ref = jax.block_until_ready(reference_forward(x, params))

    assert out.shape == (B, D, 6, 6), out.shape
    # Tolerance accounts for bf16 MXU operands (f32 accumulation/epilogue).
    assert jnp.allclose(out, ref, rtol=5e-2, atol=5e-2), float(
        jnp.max(jnp.abs(out - ref)))
    print("KERNEL_OK")
</pallas_src>

<mosaic_0001>
module attributes {stable_mosaic.version = 11 : i64} {
  func.func @_matmul_epilogue_kernel(%arg0: i32, %arg1: memref<256x36xbf16, #tpu.memory_space<vmem>>, %arg2: memref<36x128xbf16, #tpu.memory_space<vmem>>, %arg3: memref<1x128xf32, #tpu.memory_space<vmem>>, %arg4: memref<256x128xf32, #tpu.memory_space<vmem>>) attributes {dimension_semantics = [#tpu.dimension_semantics<parallel>], iteration_bounds = array<i64: 2>, scalar_prefetch = 0 : i64, scratch_operands = 0 : i64, tpu.core_type = #tpu.core_type<tc>, window_params = [{transform_indices = @transform_0, window_bounds = array<i64: 256, 36>}, {pipeline_mode = #tpu.pipeline_mode<synchronous>, transform_indices = @transform_1, window_bounds = array<i64: 36, 128>}, {pipeline_mode = #tpu.pipeline_mode<synchronous>, transform_indices = @transform_2, window_bounds = array<i64: 1, 128>}, {transform_indices = @transform_3, window_bounds = array<i64: 256, 128>}]} {
    %c0 = arith.constant 0 : index
    %c0_0 = arith.constant 0 : index
    %0 = vector.load %arg1[%c0, %c0_0] : memref<256x36xbf16, #tpu.memory_space<vmem>>, vector<256x36xbf16>
    %c0_1 = arith.constant 0 : index
    %c0_2 = arith.constant 0 : index
    %1 = vector.load %arg2[%c0_1, %c0_2] : memref<36x128xbf16, #tpu.memory_space<vmem>>, vector<36x128xbf16>
    %cst = arith.constant dense<0.000000e+00> : vector<256x128xf32>
    %2 = tpu.matmul %0, %1, %cst {dimension_numbers = #tpu.dot_dimension_numbers<[1], [0], [0], [1], [0, 0, 1, 1], [], []>} : vector<256x36xbf16>, vector<36x128xbf16>, vector<256x128xf32> -> vector<256x128xf32>
    %c0_3 = arith.constant 0 : index
    %c0_4 = arith.constant 0 : index
    %3 = vector.load %arg3[%c0_3, %c0_4] : memref<1x128xf32, #tpu.memory_space<vmem>>, vector<1x128xf32>
    %4 = vector.broadcast %3 : vector<1x128xf32> to vector<256x128xf32>
    %5 = arith.addf %2, %4 : vector<256x128xf32>
    %cst_5 = arith.constant 0.000000e+00 : f32
    %6 = vector.broadcast %cst_5 : f32 to vector<256x128xf32>
    %7 = arith.cmpf ogt, %5, %6 : vector<256x128xf32>
    %cst_6 = arith.constant 0.00999999977 : f32
    %8 = vector.broadcast %cst_6 : f32 to vector<256x128xf32>
    %9 = arith.mulf %8, %5 : vector<256x128xf32>
    %10 = arith.select %7, %5, %9 : vector<256x128xi1>, vector<256x128xf32>
    %c0_7 = arith.constant 0 : index
    %c0_8 = arith.constant 0 : index
    %11 = vector.load %arg4[%c0_7, %c0_8] : memref<256x128xf32, #tpu.memory_space<vmem>>, vector<256x128xf32>
    tpu.vector_store %arg4[%c0_7, %c0_8], %10 {strides = array<i32>} : memref<256x128xf32, #tpu.memory_space<vmem>>, vector<256x128xf32>,
    return
  }
  func.func @transform_0(%arg0: i32) -> (i32, i32) {
    %c0_i32 = arith.constant 0 : i32
    %c0_i32_0 = arith.constant 0 : i32
    return %arg0, %c0_i32 : i32, i32
  }
  func.func @transform_1(%arg0: i32) -> (i32, i32) {
    %c0_i32 = arith.constant 0 : i32
    %c0_i32_0 = arith.constant 0 : i32
    %c0_i32_1 = arith.constant 0 : i32
    return %c0_i32, %c0_i32_0 : i32, i32
  }
  func.func @transform_2(%arg0: i32) -> (i32, i32) {
    %c0_i32 = arith.constant 0 : i32
    %c0_i32_0 = arith.constant 0 : i32
    %c0_i32_1 = arith.constant 0 : i32
    return %c0_i32, %c0_i32_0 : i32, i32
  }
  func.func @transform_3(%arg0: i32) -> (i32, i32) {
    %c0_i32 = arith.constant 0 : i32
    %c0_i32_0 = arith.constant 0 : i32
    return %arg0, %c0_i32 : i32, i32
  }
}

module attributes {stable_mosaic.version = 11 : i64} {
  func.func @_matmul_epilogue_kernel(%arg0: i32, %arg1: memref<256x108xbf16, #tpu.memory_space<vmem>>, %arg2: memref<108x128xbf16, #tpu.memory_space<vmem>>, %arg3: memref<1x128xf32, #tpu.memory_space<vmem>>, %arg4: memref<256x128xf32, #tpu.memory_space<vmem>>) attributes {dimension_semantics = [#tpu.dimension_semantics<parallel>], iteration_bounds = array<i64: 1>, scalar_prefetch = 0 : i64, scratch_operands = 0 : i64, tpu.core_type = #tpu.core_type<tc>, window_params = [{transform_indices = @transform_0, window_bounds = array<i64: 256, 108>}, {pipeline_mode = #tpu.pipeline_mode<synchronous>, transform_indices = @transform_1, window_bounds = array<i64: 108, 128>}, {pipeline_mode = #tpu.pipeline_mode<synchronous>, transform_indices = @transform_2, window_bounds = array<i64: 1, 128>}, {transform_indices = @transform_3, window_bounds = array<i64: 256, 128>}]} {
    %c0 = arith.constant 0 : index
    %c0_0 = arith.constant 0 : index
    %0 = vector.load %arg1[%c0, %c0_0] : memref<256x108xbf16, #tpu.memory_space<vmem>>, vector<256x108xbf16>
    %c0_1 = arith.constant 0 : index
    %c0_2 = arith.constant 0 : index
    %1 = vector.load %arg2[%c0_1, %c0_2] : memref<108x128xbf16, #tpu.memory_space<vmem>>, vector<108x128xbf16>
    %cst = arith.constant dense<0.000000e+00> : vector<256x128xf32>
    %2 = tpu.matmul %0, %1, %cst {dimension_numbers = #tpu.dot_dimension_numbers<[1], [0], [0], [1], [0, 0, 1, 1], [], []>} : vector<256x108xbf16>, vector<108x128xbf16>, vector<256x128xf32> -> vector<256x128xf32>
    %c0_3 = arith.constant 0 : index
    %c0_4 = arith.constant 0 : index
    %3 = vector.load %arg3[%c0_3, %c0_4] : memref<1x128xf32, #tpu.memory_space<vmem>>, vector<1x128xf32>
    %4 = vector.broadcast %3 : vector<1x128xf32> to vector<256x128xf32>
    %5 = arith.addf %2, %4 : vector<256x128xf32>
    %c0_5 = arith.constant 0 : index
    %c0_6 = arith.constant 0 : index
    %6 = vector.load %arg4[%c0_5, %c0_6] : memref<256x128xf32, #tpu.memory_space<vmem>>, vector<256x128xf32>
    tpu.vector_store %arg4[%c0_5, %c0_6], %5 {strides = array<i32>} : memref<256x128xf32, #tpu.memory_space<vmem>>, vector<256x128xf32>,
    return
  }
  func.func @transform_0(%arg0: i32) -> (i32, i32) {
    %c0_i32 = arith.constant 0 : i32
    %c0_i32_0 = arith.constant 0 : i32
    return %arg0, %c0_i32 : i32, i32
  }
  func.func @transform_1(%arg0: i32) -> (i32, i32) {
    %c0_i32 = arith.constant 0 : i32
    %c0_i32_0 = arith.constant 0 : i32
    %c0_i32_1 = arith.constant 0 : i32
    return %c0_i32, %c0_i32_0 : i32, i32
  }
  func.func @transform_2(%arg0: i32) -> (i32, i32) {
    %c0_i32 = arith.constant 0 : i32
    %c0_i32_0 = arith.constant 0 : i32
    %c0_i32_1 = arith.constant 0 : i32
    return %c0_i32, %c0_i32_0 : i32, i32
  }
  func.func @transform_3(%arg0: i32) -> (i32, i32) {
    %c0_i32 = arith.constant 0 : i32
    %c0_i32_0 = arith.constant 0 : i32
    return %arg0, %c0_i32 : i32, i32
  }
}

</mosaic_0001>

<bundles_post_ra>
// kernel: resnet_block_forward.2
= control target key start
LH: loop header
LB: loop body
LE: loop exit
PB: predicated region body
PF: predicated region fallthrough
CT: control target
= control target key end

     0   :  { %s879_s12 = smov 0   ;;  %s1014_s0 = inlined_call_operand.vmem [shape: bf16[512,36], index: 0, kind: input, shape index: {}]   ;;  %s1015_s1 = inlined_call_operand.vmem [shape: bf16[36,128], index: 1, kind: input, shape index: {}]   ;;  %s1016_s2 = inlined_call_operand.vmem [shape: f32[1,128], index: 2, kind: input, shape index: {}]   ;;  %s1017_s3 = inlined_call_operand.vmem [shape: f32[512,128], index: 3, kind: output, shape index: {}]  }
   0x1 LB: > { %s712_s13 = sadd.s32 4294967295, %s857_s12   ;;  %p716_p0 = scmp.ge.s32.totalorder %s857_s12, 1  ;;  %s857_s12 = sphi %s879_s12, %s13_s12  }
   0x2   : > { %p138_p1 = scmp.lt.s32.totalorder %s857_s12, 3 }
   0x4   : > { %p139_p2 = pnand %p716_p0, %p138_p1 }
   0x5   : > { %s717_s18 = sshll.u32 (!%p139_p2), %s712_s13, 5 }
   0x6   : > { %142 = sbr.rel (%p139_p2) target bundleno = 254 (0xfe), region = 32  ;;  %p163_p3 = scmp.lt.s32.totalorder (!%p139_p2), %s717_s18, 63 }
   0xb   : > { %v832_v0 = vld [vmem:[%s1015_s1 + $0x10] ss:$0 sps:$4 sm:$0x33]   ;;  %vm363_vm0 = vcmask 1041408   ;;  %v833_v1 = vld [vmem:[%s1015_s1 + $0x8] sm:$0xff]   ;;  %v834_v3 = vld [vmem:[%s1015_s1] sm:$0xff]  }
   0xc   : > { %822 = vmatprep.subr.msk.bf16.mxu0 %vm363_vm0, %v832_v0  ;;  %823 = vmatprep.subr.msk.bf16.mxu1 %vm363_vm0, %v832_v0  ;;  %v365_v2 = vsel %vm363_vm0, %v832_v0, 0  ;;  %s1019_s18 = smov (!%p163_p3, %s717_s18), 63  ;;  %vm314_vm1 = vcmask 293888   ;;  %v939_v20 = vld [vmem:[%s1016_s2] ss:$0 sm:$0xff] }
   0xd   : > { %779 = vmatpush3.bf16.msra.mxu0 %v365_v2  ;;  %819 = vmatpush3.bf16.msra.mxu1 %v365_v2  ;;  %s718_s21 = sshll.u32 %s1019_s18, 2  ;;  %s720_s27 = sshll.u32 %s1019_s18, 3 }
   0xe   : > { %780 = vmatprep.subr.bf16.mxu0 %v833_v1  ;;  %817 = vmatprep.subr.bf16.mxu1 %v833_v1  ;;  %s902_s24 = scalar_lea.vmem %s1014_s0, %s718_s21  ;;  %s947_s30 = scalar_lea.vmem %s1017_s3, %s720_s27 }
   0xf   : > { %v835_v4 = vld [vmem:[%s902_s24] sm:$0xff]   ;;  %v837_v6 = vld [vmem:[%s902_s24 + $0x8] sm:$0xff]   ;;  %v839_v8 = vld [vmem:[%s902_s24 + $0x10] sm:$0xff]  }
  0x10   : > { %v836_v5 = vld [vmem:[%s902_s24 + $0x40] sm:$0xff]   ;;  %784 = vmatprep.mubr.msk.bf16.mxu0 %vm314_vm1, %v835_v4  ;;  %v838_v7 = vld [vmem:[%s902_s24 + $0x48] sm:$0xff]   ;;  %v840_v9 = vld [vmem:[%s902_s24 + $0x50] sm:$0xff]  }
  0x11   : > { %781 = vmatpush3.bf16.msra.mxu0 %v833_v1  ;;  %820 = vmatpush3.bf16.msra.mxu1 %v833_v1  ;;  %v841_v10 = vld [vmem:[%s902_s24 + $0x18] sm:$0xff]   ;;  %v843_v12 = vld [vmem:[%s902_s24 + $0x20] sm:$0xff]   ;;  %v845_v14 = vld [vmem:[%s902_s24 + $0x28] sm:$0xff]  }
  0x12   : > { %782 = vmatprep.subr.bf16.mxu0 %v834_v3  ;;  %818 = vmatprep.subr.bf16.mxu1 %v834_v3  ;;  %v842_v11 = vld [vmem:[%s902_s24 + $0x58] sm:$0xff]   ;;  %v844_v13 = vld [vmem:[%s902_s24 + $0x60] sm:$0xff]   ;;  %v846_v15 = vld [vmem:[%s902_s24 + $0x68] sm:$0xff]  }
  0x13   : > { %800 = vmatprep.mubr.msk.bf16.mxu1 %vm314_vm1, %v836_v5  ;;  %v847_v16 = vld [vmem:[%s902_s24 + $0x30] sm:$0xff]   ;;  %v849_v18 = vld [vmem:[%s902_s24 + $0x38] sm:$0xff]  }
  0x14   : > { %v848_v17 = vld [vmem:[%s902_s24 + $0x70] sm:$0xff]   ;;  %v850_v19 = vld [vmem:[%s902_s24 + $0x78] sm:$0xff]  }
  0x15   : > { %783 = vmatpush3.bf16.msra.mxu0 %v834_v3  ;;  %821 = vmatpush3.bf16.msra.mxu1 %v834_v3 }
  0x18   : > { %785 = vmatmul.mubr.msk.bf16.vlgmr.msra.gmra.mxu0 %vm314_vm1, %v837_v6  ;;  %801 = vmatmul.mubr.msk.bf16.vlgmr.msra.gmra.mxu1 %vm314_vm1, %v838_v7 }
  0x19   : > { %788 = vmatprep.mubr.msk.bf16.mxu0 %vm314_vm1, %v839_v8  ;;  %804 = vmatprep.mubr.msk.bf16.mxu1 %vm314_vm1, %v840_v9 }
  0x20   : > { %789 = vmatmul.mubr.msk.bf16.gmra.mxu0 %vm314_vm1, %v841_v10  ;;  %805 = vmatmul.mubr.msk.bf16.gmra.mxu1 %vm314_vm1, %v842_v11 }
  0x21   : > { %792 = vmatprep.mubr.msk.bf16.mxu0 %vm314_vm1, %v843_v12  ;;  %808 = vmatprep.mubr.msk.bf16.mxu1 %vm314_vm1, %v844_v13 }
  0x28   : > { %793 = vmatmul.mubr.msk.bf16.gmra.mxu0 %vm314_vm1, %v845_v14  ;;  %809 = vmatmul.mubr.msk.bf16.gmra.mxu1 %vm314_vm1, %v846_v15 }
  0x29   : > { %796 = vmatprep.mubr.msk.bf16.mxu0 %vm314_vm1, %v847_v16  ;;  %812 = vmatprep.mubr.msk.bf16.mxu1 %vm314_vm1, %v848_v17 }
  0x30   : > { %797 = vmatmul.mubr.msk.bf16.gmra.mxu0 %vm314_vm1, %v849_v18  ;;  %813 = vmatmul.mubr.msk.bf16.gmra.mxu1 %vm314_vm1, %v850_v19 }
  0xd8   : > { %v786_v21 = vpop.f32.mrf.mxu0  ;;  %v802_v22 = vpop.f32.mrf.mxu1 }
  0xd9   : > { %v410_v23 = vadd.f32 %v786_v21, %v939_v20  ;;  %v474_v24 = vadd.f32 %v802_v22, %v939_v20 }
  0xda   : > { %v401_v25 = vpop.f32.mrf.mxu0  ;;  %v465_v26 = vpop.f32.mrf.mxu1 }
  0xdb   : > { %vm530_vm2 = vcmp.gt.f32.partialorder %v410_v23, 0.0  ;;  %v562_v27 = vmul.f32 0.01, %v410_v23  ;;  %vm546_vm3 = vcmp.gt.f32.partialorder %v474_v24, 0.0  ;;  %v578_v28 = vmul.f32 0.01, %v474_v24 }
  0xdc   : > { %v402_v29 = vadd.f32 %v939_v20, %v401_v25  ;;  %v466_v30 = vadd.f32 %v939_v20, %v465_v26  ;;  %v787_v31 = vpop.f32.mrf.mxu0  ;;  %v803_v32 = vpop.f32.mrf.mxu1 }
  0xdd   : > { %v594_v33 = vsel %vm530_vm2, %v410_v23, %v562_v27  ;;  %v610_v34 = vsel %vm546_vm3, %v474_v24, %v578_v28  ;;  %v413_v35 = vadd.f32 %v787_v31, %v939_v20  ;;  %v477_v36 = vadd.f32 %v803_v32, %v939_v20 }
  0xde   : > { %626 = vst [vmem:[%s947_s30 + $0x10] sm:$0xff] %v594_v33  ;;  %642 = vst [vmem:[%s947_s30 + $0x90] sm:$0xff] %v610_v34  ;;  %vm528_vm4 = vcmp.gt.f32.partialorder %v402_v29, 0.0  ;;  %v560_v37 = vmul.f32 0.01, %v402_v29  ;;  %vm544_vm5 = vcmp.gt.f32.partialorder %v466_v30, 0.0  ;;  %v404_v39 = vpop.f32.mrf.mxu0  ;;  %v468_v40 = vpop.f32.mrf.mxu1 }
  0xdf   : > { %v576_v38 = vmul.f32 0.01, %v466_v30  ;;  %vm531_vm6 = vcmp.gt.f32.partialorder %v413_v35, 0.0  ;;  %v563_v41 = vmul.f32 0.01, %v413_v35  ;;  %vm547_vm7 = vcmp.gt.f32.partialorder %v477_v36, 0.0 }
  0xe0   : > { %v579_v42 = vmul.f32 0.01, %v477_v36  ;;  %v592_v43 = vsel %vm528_vm4, %v402_v29, %v560_v37  ;;  %v405_v45 = vadd.f32 %v939_v20, %v404_v39  ;;  %v469_v46 = vadd.f32 %v939_v20, %v468_v40  ;;  %v790_v47 = vpop.f32.mrf.mxu0  ;;  %v806_v48 = vpop.f32.mrf.mxu1 }
  0xe1   : > { %v608_v44 = vsel %vm544_vm5, %v466_v30, %v576_v38  ;;  %624 = vst [vmem:[%s947_s30] sm:$0xff] %v592_v43  ;;  %v595_v49 = vsel %vm531_vm6, %v413_v35, %v563_v41  ;;  %v426_v51 = vadd.f32 %v790_v47, %v939_v20  ;;  %v490_v52 = vadd.f32 %v806_v48, %v939_v20 }
  0xe2   : > { %640 = vst [vmem:[%s947_s30 + $0x80] sm:$0xff] %v608_v44  ;;  %v611_v50 = vsel %vm547_vm7, %v477_v36, %v579_v42  ;;  %627 = vst [vmem:[%s947_s30 + $0x18] sm:$0xff] %v595_v49  ;;  %vm529_vm8 = vcmp.gt.f32.partialorder %v405_v45, 0.0  ;;  %v561_v53 = vmul.f32 0.01, %v405_v45  ;;  %vm545_vm9 = vcmp.gt.f32.partialorder %v469_v46, 0.0  ;;  %v417_v55 = vpop.f32.mrf.mxu0  ;;  %v481_v56 = vpop.f32.mrf.mxu1 }
  0xe3   : > { %643 = vst [vmem:[%s947_s30 + $0x98] sm:$0xff] %v611_v50  ;;  %v577_v54 = vmul.f32 0.01, %v469_v46  ;;  %vm534_vm10 = vcmp.gt.f32.partialorder %v426_v51, 0.0  ;;  %v566_v57 = vmul.f32 0.01, %v426_v51  ;;  %v418_v61 = vadd.f32 %v939_v20, %v417_v55 }
  0xe4   : > { %vm550_vm11 = vcmp.gt.f32.partialorder %v490_v52, 0.0  ;;  %v582_v58 = vmul.f32 0.01, %v490_v52  ;;  %v593_v59 = vsel %vm529_vm8, %v405_v45, %v561_v53  ;;  %v482_v62 = vadd.f32 %v939_v20, %v481_v56  ;;  %v791_v63 = vpop.f32.mrf.mxu0  ;;  %v807_v0 = vpop.f32.mrf.mxu1 }
  0xe5   : > { %v609_v60 = vsel %vm545_vm9, %v469_v46, %v577_v54  ;;  %625 = vst [vmem:[%s947_s30 + $0x8] sm:$0xff] %v593_v59  ;;  %v598_v1 = vsel %vm534_vm10, %v426_v51, %v566_v57  ;;  %v429_v3 = vadd.f32 %v791_v63, %v939_v20  ;;  %v493_v4 = vadd.f32 %v807_v0, %v939_v20 }
  0xe6   : > { %641 = vst [vmem:[%s947_s30 + $0x88] sm:$0xff] %v609_v60  ;;  %v614_v2 = vsel %vm550_vm11, %v490_v52, %v582_v58  ;;  %630 = vst [vmem:[%s947_s30 + $0x30] sm:$0xff] %v598_v1  ;;  %vm532_vm12 = vcmp.gt.f32.partialorder %v418_v61, 0.0  ;;  %v564_v5 = vmul.f32 0.01, %v418_v61  ;;  %vm548_vm13 = vcmp.gt.f32.partialorder %v482_v62, 0.0  ;;  %v420_v7 = vpop.f32.mrf.mxu0  ;;  %v484_v8 = vpop.f32.mrf.mxu1 }
  0xe7   : > { %646 = vst [vmem:[%s947_s30 + $0xb0] sm:$0xff] %v614_v2  ;;  %v580_v6 = vmul.f32 0.01, %v482_v62  ;;  %vm535_vm14 = vcmp.gt.f32.partialorder %v429_v3, 0.0  ;;  %v567_v9 = vmul.f32 0.01, %v429_v3  ;;  %v421_v13 = vadd.f32 %v939_v20, %v420_v7 }
  0xe8   : > { %vm551_vm15 = vcmp.gt.f32.partialorder %v493_v4, 0.0  ;;  %v583_v10 = vmul.f32 0.01, %v493_v4  ;;  %v596_v11 = vsel %vm532_vm12, %v418_v61, %v564_v5  ;;  %v485_v14 = vadd.f32 %v939_v20, %v484_v8  ;;  %v794_v15 = vpop.f32.mrf.mxu0  ;;  %v810_v16 = vpop.f32.mrf.mxu1 }
  0xe9   : > { %v612_v12 = vsel %vm548_vm13, %v482_v62, %v580_v6  ;;  %628 = vst [vmem:[%s947_s30 + $0x20] sm:$0xff] %v596_v11  ;;  %v599_v17 = vsel %vm535_vm14, %v429_v3, %v567_v9  ;;  %v442_v19 = vadd.f32 %v794_v15, %v939_v20  ;;  %v506_v21 = vadd.f32 %v810_v16, %v939_v20 }
  0xea   : > { %644 = vst [vmem:[%s947_s30 + $0xa0] sm:$0xff] %v612_v12  ;;  %v615_v18 = vsel %vm551_vm15, %v493_v4, %v583_v10  ;;  %631 = vst [vmem:[%s947_s30 + $0x38] sm:$0xff] %v599_v17  ;;  %vm533_vm0 = vcmp.gt.f32.partialorder %v421_v13, 0.0  ;;  %v565_v22 = vmul.f32 0.01, %v421_v13  ;;  %vm549_vm1 = vcmp.gt.f32.partialorder %v485_v14, 0.0  ;;  %v433_v24 = vpop.f32.mrf.mxu0  ;;  %v497_v25 = vpop.f32.mrf.mxu1 }
  0xeb   : > { %647 = vst [vmem:[%s947_s30 + $0xb8] sm:$0xff] %v615_v18  ;;  %v581_v23 = vmul.f32 0.01, %v485_v14  ;;  %vm538_vm2 = vcmp.gt.f32.partialorder %v442_v19, 0.0  ;;  %v570_v26 = vmul.f32 0.01, %v442_v19  ;;  %v434_v30 = vadd.f32 %v939_v20, %v433_v24 }
  0xec   : > { %vm554_vm3 = vcmp.gt.f32.partialorder %v506_v21, 0.0  ;;  %v586_v27 = vmul.f32 0.01, %v506_v21  ;;  %v597_v28 = vsel %vm533_vm0, %v421_v13, %v565_v22  ;;  %v498_v31 = vadd.f32 %v939_v20, %v497_v25  ;;  %v795_v32 = vpop.f32.mrf.mxu0  ;;  %v811_v33 = vpop.f32.mrf.mxu1 }
  0xed   : > { %v613_v29 = vsel %vm549_vm1, %v485_v14, %v581_v23  ;;  %629 = vst [vmem:[%s947_s30 + $0x28] sm:$0xff] %v597_v28  ;;  %v602_v34 = vsel %vm538_vm2, %v442_v19, %v570_v26  ;;  %v445_v36 = vadd.f32 %v795_v32, %v939_v20  ;;  %v509_v37 = vadd.f32 %v811_v33, %v939_v20 }
  0xee   : > { %645 = vst [vmem:[%s947_s30 + $0xa8] sm:$0xff] %v613_v29  ;;  %v618_v35 = vsel %vm554_vm3, %v506_v21, %v586_v27  ;;  %634 = vst [vmem:[%s947_s30 + $0x50] sm:$0xff] %v602_v34  ;;  %vm536_vm4 = vcmp.gt.f32.partialorder %v434_v30, 0.0  ;;  %v568_v38 = vmul.f32 0.01, %v434_v30  ;;  %vm552_vm5 = vcmp.gt.f32.partialorder %v498_v31, 0.0  ;;  %v436_v40 = vpop.f32.mrf.mxu0  ;;  %v500_v41 = vpop.f32.mrf.mxu1 }
  0xef   : > { %650 = vst [vmem:[%s947_s30 + $0xd0] sm:$0xff] %v618_v35  ;;  %v584_v39 = vmul.f32 0.01, %v498_v31  ;;  %vm539_vm6 = vcmp.gt.f32.partialorder %v445_v36, 0.0  ;;  %v571_v42 = vmul.f32 0.01, %v445_v36  ;;  %v437_v46 = vadd.f32 %v939_v20, %v436_v40 }
  0xf0   : > { %vm555_vm7 = vcmp.gt.f32.partialorder %v509_v37, 0.0  ;;  %v587_v43 = vmul.f32 0.01, %v509_v37  ;;  %v600_v44 = vsel %vm536_vm4, %v434_v30, %v568_v38  ;;  %v501_v47 = vadd.f32 %v939_v20, %v500_v41  ;;  %v798_v48 = vpop.f32.mrf.mxu0  ;;  %v814_v49 = vpop.f32.mrf.mxu1 }
  0xf1   : > { %v616_v45 = vsel %vm552_vm5, %v498_v31, %v584_v39  ;;  %632 = vst [vmem:[%s947_s30 + $0x40] sm:$0xff] %v600_v44  ;;  %v603_v50 = vsel %vm539_vm6, %v445_v36, %v571_v42  ;;  %v458_v52 = vadd.f32 %v798_v48, %v939_v20  ;;  %v522_v53 = vadd.f32 %v814_v49, %v939_v20 }
  0xf2   : > { %648 = vst [vmem:[%s947_s30 + $0xc0] sm:$0xff] %v616_v45  ;;  %v619_v51 = vsel %vm555_vm7, %v509_v37, %v587_v43  ;;  %635 = vst [vmem:[%s947_s30 + $0x58] sm:$0xff] %v603_v50  ;;  %vm537_vm8 = vcmp.gt.f32.partialorder %v437_v46, 0.0  ;;  %v569_v54 = vmul.f32 0.01, %v437_v46  ;;  %vm553_vm9 = vcmp.gt.f32.partialorder %v501_v47, 0.0  ;;  %v449_v56 = vpop.f32.mrf.mxu0  ;;  %v513_v57 = vpop.f32.mrf.mxu1 }
  0xf3   : > { %651 = vst [vmem:[%s947_s30 + $0xd8] sm:$0xff] %v619_v51  ;;  %v585_v55 = vmul.f32 0.01, %v501_v47  ;;  %vm542_vm10 = vcmp.gt.f32.partialorder %v458_v52, 0.0  ;;  %v574_v58 = vmul.f32 0.01, %v458_v52  ;;  %v450_v62 = vadd.f32 %v939_v20, %v449_v56 }
  0xf4   : > { %vm558_vm11 = vcmp.gt.f32.partialorder %v522_v53, 0.0  ;;  %v590_v59 = vmul.f32 0.01, %v522_v53  ;;  %v601_v60 = vsel %vm537_vm8, %v437_v46, %v569_v54  ;;  %v514_v63 = vadd.f32 %v939_v20, %v513_v57  ;;  %v799_v0 = vpop.f32.mrf.mxu0  ;;  %v815_v1 = vpop.f32.mrf.mxu1 }
  0xf5   : > { %v617_v61 = vsel %vm553_vm9, %v501_v47, %v585_v55  ;;  %633 = vst [vmem:[%s947_s30 + $0x48] sm:$0xff] %v601_v60  ;;  %v606_v2 = vsel %vm542_vm10, %v458_v52, %v574_v58  ;;  %v461_v4 = vadd.f32 %v799_v0, %v939_v20  ;;  %v525_v5 = vadd.f32 %v815_v1, %v939_v20 }
  0xf6   : > { %649 = vst [vmem:[%s947_s30 + $0xc8] sm:$0xff] %v617_v61  ;;  %v622_v3 = vsel %vm558_vm11, %v522_v53, %v590_v59  ;;  %638 = vst [vmem:[%s947_s30 + $0x70] sm:$0xff] %v606_v2  ;;  %vm540_vm12 = vcmp.gt.f32.partialorder %v450_v62, 0.0  ;;  %v572_v6 = vmul.f32 0.01, %v450_v62  ;;  %vm556_vm13 = vcmp.gt.f32.partialorder %v514_v63, 0.0  ;;  %v452_v8 = vpop.f32.mrf.mxu0  ;;  %v516_v9 = vpop.f32.mrf.mxu1 }
  0xf7   : > { %654 = vst [vmem:[%s947_s30 + $0xf0] sm:$0xff] %v622_v3  ;;  %v588_v7 = vmul.f32 0.01, %v514_v63  ;;  %vm543_vm14 = vcmp.gt.f32.partialorder %v461_v4, 0.0  ;;  %v575_v10 = vmul.f32 0.01, %v461_v4  ;;  %v453_v14 = vadd.f32 %v939_v20, %v452_v8 }
  0xf8   : > { %vm559_vm15 = vcmp.gt.f32.partialorder %v525_v5, 0.0  ;;  %v591_v11 = vmul.f32 0.01, %v525_v5  ;;  %v604_v12 = vsel %vm540_vm12, %v450_v62, %v572_v6  ;;  %v517_v15 = vadd.f32 %v939_v20, %v516_v9 }
  0xf9   : > { %v620_v13 = vsel %vm556_vm13, %v514_v63, %v588_v7  ;;  %636 = vst [vmem:[%s947_s30 + $0x60] sm:$0xff] %v604_v12  ;;  %v607_v16 = vsel %vm543_vm14, %v461_v4, %v575_v10  ;;  %vm541_vm0 = vcmp.gt.f32.partialorder %v453_v14, 0.0  ;;  %v573_v18 = vmul.f32 0.01, %v453_v14 }
  0xfa   : > { %652 = vst [vmem:[%s947_s30 + $0xe0] sm:$0xff] %v620_v13  ;;  %v623_v17 = vsel %vm559_vm15, %v525_v5, %v591_v11  ;;  %639 = vst [vmem:[%s947_s30 + $0x78] sm:$0xff] %v607_v16  ;;  %vm557_vm1 = vcmp.gt.f32.partialorder %v517_v15, 0.0  ;;  %v589_v19 = vmul.f32 0.01, %v517_v15 }
  0xfb   : > { %655 = vst [vmem:[%s947_s30 + $0xf8] sm:$0xff] %v623_v17  ;;  %v605_v21 = vsel %vm541_vm0, %v453_v14, %v573_v18 }
  0xfc   : > { %v621_v22 = vsel %vm557_vm1, %v517_v15, %v589_v19  ;;  %637 = vst [vmem:[%s947_s30 + $0x68] sm:$0xff] %v605_v21 }
  0xfd   : > { %653 = vst [vmem:[%s947_s30 + $0xe8] sm:$0xff] %v621_v22 }
  0xfe PF: > { %s13_s12 = sadd.s32 1, %s857_s12  }
  0xff   : > { %p10_p4 = scmp.ge.s32.totalorder %s13_s12, 4  }
 0x101   :  { %12 = sbr.rel (!%p10_p4) target bundleno = 1 (0x1), region = 62 }

// kernel: resnet_block_forward.3
= control target key start
LH: loop header
LB: loop body
LE: loop exit
PB: predicated region body
PF: predicated region fallthrough
CT: control target
= control target key end

     0   :  { %vm238_vm0 = vcmask 1045504   ;;  %vm189_vm1 = vcmask 883712   ;;  %s825_s1 = inlined_call_operand.vmem [shape: bf16[108,128], index: 1, kind: input, shape index: {}]   ;;  %s826_s0 = inlined_call_operand.vmem [shape: bf16[256,108], index: 0, kind: input, shape index: {}]   ;;  %s827_s2 = inlined_call_operand.vmem [shape: f32[1,128], index: 2, kind: input, shape index: {}]   ;;  %s828_s3 = inlined_call_operand.vmem [shape: f32[256,128], index: 3, kind: output, shape index: {}]  }
   0x1   :  { %v564_v0 = vld [vmem:[%s825_s1 + $0x30] sm:$0x3f]   ;;  %v565_v1 = vld [vmem:[%s825_s1 + $0x28] sm:$0xff]   ;;  %v566_v3 = vld [vmem:[%s825_s1 + $0x20] sm:$0xff]  }
   0x2   :  { %562 = vmatprep.subr.msk.bf16.mxu0 %vm238_vm0, %v564_v0  ;;  %563 = vmatprep.subr.msk.bf16.mxu1 %vm238_vm0, %v564_v0  ;;  %v240_v2 = vsel %vm238_vm0, %v564_v0, 0  ;;  %v567_v4 = vld [vmem:[%s825_s1 + $0x18] sm:$0xff]   ;;  %v571_v5 = vld [vmem:[%s826_s0] sm:$0xff]   ;;  %v568_v7 = vld [vmem:[%s825_s1 + $0x10] sm:$0xff]  }
   0x3   :  { %503 = vmatpush3.bf16.msra.mxu0 %v240_v2  ;;  %555 = vmatpush3.bf16.msra.mxu1 %v240_v2  ;;  %v572_v6 = vld [vmem:[%s826_s0 + $0x40] sm:$0xff]   ;;  %v569_v8 = vld [vmem:[%s825_s1 + $0x8] sm:$0xff]   ;;  %v575_v12 = vld [vmem:[%s826_s0 + $0x10] sm:$0xff]  }
   0x4   :  { %504 = vmatprep.subr.bf16.mxu0 %v565_v1  ;;  %549 = vmatprep.subr.bf16.mxu1 %v565_v1  ;;  %v570_v9 = vld [vmem:[%s825_s1] sm:$0xff]   ;;  %v573_v10 = vld [vmem:[%s826_s0 + $0x8] sm:$0xff]   ;;  %v576_v13 = vld [vmem:[%s826_s0 + $0x50] sm:$0xff]  }
   0x5   :  { %516 = vmatprep.mubr.msk.bf16.mxu0 %vm189_vm1, %v571_v5  ;;  %532 = vmatprep.mubr.msk.bf16.mxu1 %vm189_vm1, %v572_v6  ;;  %v574_v11 = vld [vmem:[%s826_s0 + $0x48] sm:$0xff]   ;;  %v577_v14 = vld [vmem:[%s826_s0 + $0x18] sm:$0xff]   ;;  %v579_v16 = vld [vmem:[%s826_s0 + $0x20] sm:$0xff]  }
   0x6   :  { %v578_v15 = vld [vmem:[%s826_s0 + $0x58] sm:$0xff]   ;;  %v580_v17 = vld [vmem:[%s826_s0 + $0x60] sm:$0xff]   ;;  %v581_v18 = vld [vmem:[%s826_s0 + $0x28] sm:$0xff]  }
   0x7   :  { %505 = vmatpush3.bf16.msra.mxu0 %v565_v1  ;;  %556 = vmatpush3.bf16.msra.mxu1 %v565_v1  ;;  %v582_v19 = vld [vmem:[%s826_s0 + $0x68] sm:$0xff]   ;;  %v583_v20 = vld [vmem:[%s826_s0 + $0x30] sm:$0xff]   ;;  %v585_v22 = vld [vmem:[%s826_s0 + $0x38] sm:$0xff]  }
   0x8   :  { %506 = vmatprep.subr.bf16.mxu0 %v566_v3  ;;  %550 = vmatprep.subr.bf16.mxu1 %v566_v3  ;;  %v584_v21 = vld [vmem:[%s826_s0 + $0x70] sm:$0xff]   ;;  %v586_v23 = vld [vmem:[%s826_s0 + $0x78] sm:$0xff]   ;;  %v695_v24 = vld [vmem:[%s827_s2] ss:$0 sm:$0xff] }
   0xb   :  { %507 = vmatpush3.bf16.msra.mxu0 %v566_v3  ;;  %557 = vmatpush3.bf16.msra.mxu1 %v566_v3 }
   0xc   :  { %508 = vmatprep.subr.bf16.mxu0 %v567_v4  ;;  %551 = vmatprep.subr.bf16.mxu1 %v567_v4 }
   0xf   :  { %509 = vmatpush3.bf16.msra.mxu0 %v567_v4  ;;  %558 = vmatpush3.bf16.msra.mxu1 %v567_v4 }
  0x10   :  { %510 = vmatprep.subr.bf16.mxu0 %v568_v7  ;;  %552 = vmatprep.subr.bf16.mxu1 %v568_v7 }
  0x13   :  { %511 = vmatpush3.bf16.msra.mxu0 %v568_v7  ;;  %559 = vmatpush3.bf16.msra.mxu1 %v568_v7 }
  0x14   :  { %512 = vmatprep.subr.bf16.mxu0 %v569_v8  ;;  %553 = vmatprep.subr.bf16.mxu1 %v569_v8 }
  0x17   :  { %513 = vmatpush3.bf16.msra.mxu0 %v569_v8  ;;  %560 = vmatpush3.bf16.msra.mxu1 %v569_v8 }
  0x18   :  { %514 = vmatprep.subr.bf16.mxu0 %v570_v9  ;;  %554 = vmatprep.subr.bf16.mxu1 %v570_v9 }
  0x1b   :  { %515 = vmatpush3.bf16.msra.mxu0 %v570_v9  ;;  %561 = vmatpush3.bf16.msra.mxu1 %v570_v9 }
  0x1e   :  { %517 = vmatmul.mubr.msk.bf16.vlgmr.msra.gmra.mxu0 %vm189_vm1, %v573_v10  ;;  %533 = vmatmul.mubr.msk.bf16.vlgmr.msra.gmra.mxu1 %vm189_vm1, %v574_v11 }
  0x1f   :  { %520 = vmatprep.mubr.msk.bf16.mxu0 %vm189_vm1, %v575_v12  ;;  %536 = vmatprep.mubr.msk.bf16.mxu1 %vm189_vm1, %v576_v13 }
  0x26   :  { %521 = vmatmul.mubr.msk.bf16.gmra.mxu0 %vm189_vm1, %v577_v14  ;;  %537 = vmatmul.mubr.msk.bf16.gmra.mxu1 %vm189_vm1, %v578_v15 }
  0x27   :  { %524 = vmatprep.mubr.msk.bf16.mxu0 %vm189_vm1, %v579_v16  ;;  %540 = vmatprep.mubr.msk.bf16.mxu1 %vm189_vm1, %v580_v17 }
  0x2e   :  { %525 = vmatmul.mubr.msk.bf16.gmra.mxu0 %vm189_vm1, %v581_v18  ;;  %541 = vmatmul.mubr.msk.bf16.gmra.mxu1 %vm189_vm1, %v582_v19 }
  0x2f   :  { %528 = vmatprep.mubr.msk.bf16.mxu0 %vm189_vm1, %v583_v20  ;;  %544 = vmatprep.mubr.msk.bf16.mxu1 %vm189_vm1, %v584_v21 }
  0x36   :  { %529 = vmatmul.mubr.msk.bf16.gmra.mxu0 %vm189_vm1, %v585_v22  ;;  %545 = vmatmul.mubr.msk.bf16.gmra.mxu1 %vm189_vm1, %v586_v23 }
  0xde   :  { %v518_v25 = vpop.f32.mrf.mxu0  ;;  %v534_v26 = vpop.f32.mrf.mxu1 }
  0xdf   :  { %v285_v27 = vadd.f32 %v518_v25, %v695_v24  ;;  %v349_v28 = vadd.f32 %v534_v26, %v695_v24 }
  0xe0   :  { %v276_v29 = vpop.f32.mrf.mxu0  ;;  %v340_v30 = vpop.f32.mrf.mxu1 }
  0xe1   :  { %405 = vst [vmem:[%s828_s3 + $0x10] sm:$0xff] %v285_v27  ;;  %421 = vst [vmem:[%s828_s3 + $0x90] sm:$0xff] %v349_v28  ;;  %v277_v31 = vadd.f32 %v695_v24, %v276_v29  ;;  %v341_v32 = vadd.f32 %v695_v24, %v340_v30 }
  0xe2   :  { %v519_v33 = vpop.f32.mrf.mxu0  ;;  %v535_v34 = vpop.f32.mrf.mxu1 }
  0xe3   :  { %403 = vst [vmem:[%s828_s3] sm:$0xff] %v277_v31  ;;  %419 = vst [vmem:[%s828_s3 + $0x80] sm:$0xff] %v341_v32  ;;  %v288_v35 = vadd.f32 %v519_v33, %v695_v24  ;;  %v352_v36 = vadd.f32 %v535_v34, %v695_v24 }
  0xe4   :  { %v279_v37 = vpop.f32.mrf.mxu0  ;;  %v343_v38 = vpop.f32.mrf.mxu1 }
  0xe5   :  { %406 = vst [vmem:[%s828_s3 + $0x18] sm:$0xff] %v288_v35  ;;  %422 = vst [vmem:[%s828_s3 + $0x98] sm:$0xff] %v352_v36  ;;  %v280_v39 = vadd.f32 %v695_v24, %v279_v37  ;;  %v344_v40 = vadd.f32 %v695_v24, %v343_v38 }
  0xe6   :  { %v522_v41 = vpop.f32.mrf.mxu0  ;;  %v538_v42 = vpop.f32.mrf.mxu1 }
  0xe7   :  { %404 = vst [vmem:[%s828_s3 + $0x8] sm:$0xff] %v280_v39  ;;  %420 = vst [vmem:[%s828_s3 + $0x88] sm:$0xff] %v344_v40  ;;  %v301_v43 = vadd.f32 %v522_v41, %v695_v24  ;;  %v365_v44 = vadd.f32 %v538_v42, %v695_v24 }
  0xe8   :  { %v292_v45 = vpop.f32.mrf.mxu0  ;;  %v356_v46 = vpop.f32.mrf.mxu1 }
  0xe9   :  { %409 = vst [vmem:[%s828_s3 + $0x30] sm:$0xff] %v301_v43  ;;  %425 = vst [vmem:[%s828_s3 + $0xb0] sm:$0xff] %v365_v44  ;;  %v293_v47 = vadd.f32 %v695_v24, %v292_v45  ;;  %v357_v48 = vadd.f32 %v695_v24, %v356_v46 }
  0xea   :  { %v523_v49 = vpop.f32.mrf.mxu0  ;;  %v539_v50 = vpop.f32.mrf.mxu1 }
  0xeb   :  { %407 = vst [vmem:[%s828_s3 + $0x20] sm:$0xff] %v293_v47  ;;  %423 = vst [vmem:[%s828_s3 + $0xa0] sm:$0xff] %v357_v48  ;;  %v304_v51 = vadd.f32 %v523_v49, %v695_v24  ;;  %v368_v52 = vadd.f32 %v539_v50, %v695_v24 }
  0xec   :  { %v295_v53 = vpop.f32.mrf.mxu0  ;;  %v359_v54 = vpop.f32.mrf.mxu1 }
  0xed   :  { %410 = vst [vmem:[%s828_s3 + $0x38] sm:$0xff] %v304_v51  ;;  %426 = vst [vmem:[%s828_s3 + $0xb8] sm:$0xff] %v368_v52  ;;  %v296_v55 = vadd.f32 %v695_v24, %v295_v53  ;;  %v360_v56 = vadd.f32 %v695_v24, %v359_v54 }
  0xee   :  { %v526_v57 = vpop.f32.mrf.mxu0  ;;  %v542_v58 = vpop.f32.mrf.mxu1 }
  0xef   :  { %408 = vst [vmem:[%s828_s3 + $0x28] sm:$0xff] %v296_v55  ;;  %424 = vst [vmem:[%s828_s3 + $0xa8] sm:$0xff] %v360_v56  ;;  %v317_v59 = vadd.f32 %v526_v57, %v695_v24  ;;  %v381_v60 = vadd.f32 %v542_v58, %v695_v24 }
  0xf0   :  { %v308_v61 = vpop.f32.mrf.mxu0  ;;  %v372_v62 = vpop.f32.mrf.mxu1 }
  0xf1   :  { %413 = vst [vmem:[%s828_s3 + $0x50] sm:$0xff] %v317_v59  ;;  %429 = vst [vmem:[%s828_s3 + $0xd0] sm:$0xff] %v381_v60  ;;  %v309_v63 = vadd.f32 %v695_v24, %v308_v61  ;;  %v373_v0 = vadd.f32 %v695_v24, %v372_v62 }
  0xf2   :  { %v527_v1 = vpop.f32.mrf.mxu0  ;;  %v543_v2 = vpop.f32.mrf.mxu1 }
  0xf3   :  { %411 = vst [vmem:[%s828_s3 + $0x40] sm:$0xff] %v309_v63  ;;  %427 = vst [vmem:[%s828_s3 + $0xc0] sm:$0xff] %v373_v0  ;;  %v320_v3 = vadd.f32 %v527_v1, %v695_v24  ;;  %v384_v4 = vadd.f32 %v543_v2, %v695_v24 }
  0xf4   :  { %v311_v5 = vpop.f32.mrf.mxu0  ;;  %v375_v6 = vpop.f32.mrf.mxu1 }
  0xf5   :  { %414 = vst [vmem:[%s828_s3 + $0x58] sm:$0xff] %v320_v3  ;;  %430 = vst [vmem:[%s828_s3 + $0xd8] sm:$0xff] %v384_v4  ;;  %v312_v7 = vadd.f32 %v695_v24, %v311_v5  ;;  %v376_v8 = vadd.f32 %v695_v24, %v375_v6 }
  0xf6   :  { %v530_v9 = vpop.f32.mrf.mxu0  ;;  %v546_v10 = vpop.f32.mrf.mxu1 }
  0xf7   :  { %412 = vst [vmem:[%s828_s3 + $0x48] sm:$0xff] %v312_v7  ;;  %428 = vst [vmem:[%s828_s3 + $0xc8] sm:$0xff] %v376_v8  ;;  %v333_v11 = vadd.f32 %v530_v9, %v695_v24  ;;  %v397_v12 = vadd.f32 %v546_v10, %v695_v24 }
  0xf8   :  { %v324_v13 = vpop.f32.mrf.mxu0  ;;  %v388_v14 = vpop.f32.mrf.mxu1 }
  0xf9   :  { %417 = vst [vmem:[%s828_s3 + $0x70] sm:$0xff] %v333_v11  ;;  %433 = vst [vmem:[%s828_s3 + $0xf0] sm:$0xff] %v397_v12  ;;  %v325_v15 = vadd.f32 %v695_v24, %v324_v13  ;;  %v389_v16 = vadd.f32 %v695_v24, %v388_v14 }
  0xfa   :  { %v531_v17 = vpop.f32.mrf.mxu0  ;;  %v547_v18 = vpop.f32.mrf.mxu1 }
  0xfb   :  { %415 = vst [vmem:[%s828_s3 + $0x60] sm:$0xff] %v325_v15  ;;  %431 = vst [vmem:[%s828_s3 + $0xe0] sm:$0xff] %v389_v16  ;;  %v336_v19 = vadd.f32 %v531_v17, %v695_v24  ;;  %v400_v20 = vadd.f32 %v547_v18, %v695_v24 }
  0xfc   :  { %v327_v21 = vpop.f32.mrf.mxu0  ;;  %v391_v22 = vpop.f32.mrf.mxu1 }
  0xfd   :  { %418 = vst [vmem:[%s828_s3 + $0x78] sm:$0xff] %v336_v19  ;;  %434 = vst [vmem:[%s828_s3 + $0xf8] sm:$0xff] %v400_v20  ;;  %v328_v23 = vadd.f32 %v695_v24, %v327_v21  ;;  %v392_v25 = vadd.f32 %v695_v24, %v391_v22 }
  0xff   :  { %416 = vst [vmem:[%s828_s3 + $0x68] sm:$0xff] %v328_v23  ;;  %432 = vst [vmem:[%s828_s3 + $0xe8] sm:$0xff] %v392_v25 }

</bundles_post_ra>
